<compile_context>
chip_gen: v5e
topology: v5e:2x2
jax: 0.10.0
libtpu: 0.0.40
codegen_flags: <defaults>
</compile_context>

<pallas_src>
import functools

import jax
import jax.numpy as jnp
from jax.experimental import pallas as pl
from jax.experimental.pallas import tpu as pltpu

# ----------------------------- model dimensions -----------------------------
WORD_EMB = 16          # args['word_emb_dim']
TAG_EMB = 8            # args['tag_emb_dim']
TRANSFORMED = 16       # args['transformed_dim']
PRETRAIN_DIM = 24      # emb_matrix.shape[1]
HIDDEN = 32            # args['hidden_dim']
NUM_LAYERS = 2         # args['num_layers']
DEEP_BIAFF = 64        # args['deep_biaff_hidden_dim']

N_WORD, N_LEMMA = 50, 50
N_UPOS, N_XPOS = 18, 20
N_FEATS0, N_FEATS1 = 10, 12
N_DEPREL = 8
N_PRETRAIN = 40

# conceptual layer-0 input: transformed(16) + 2*word_emb(32) + tag_emb(8) + tag_emb(8)
INPUT_SIZE = TRANSFORMED + 2 * WORD_EMB + TAG_EMB + TAG_EMB        # = 64
# after folding trans_pretrained into layer-0 w_all we feed the raw 24-dim pretrained emb
INPUT_SIZE_RAW = PRETRAIN_DIM + 2 * WORD_EMB + TAG_EMB + TAG_EMB   # = 72

# biaffine head layout: 4 groups sharing the fused h1/h2 projection (4*D = 256)
#   group 0: unlabeled (1 slot)          -> slot 0
#   group 1: deprel    (N_DEPREL slots)  -> slots 1 .. N_DEPREL
#   group 2: linearization (1 slot)      -> slot N_DEPREL+1
#   group 3: distance      (1 slot)      -> slot N_DEPREL+2
SLOT_GROUP = [0] + [1] * N_DEPREL + [2, 3]
O_TOTAL = len(SLOT_GROUP)                 # = 11


def _round_up(x, m):
    return (x + m - 1) // m * m


# --------------------- kernel 1: fused HighwayLSTM projection ----------------
def _hwy_proj_kernel(x_ref, w_ref, b_ref, xf_ref, xb_ref, hwy_ref):
    # x:(TM,In) bf16, w:(In,12H) bf16, b:(1,12H) f32
    # outputs: xf/xb:(TM,4H) f32 (LSTM input projections), hwy:(TM,2H) f32 = sigm(gate)*tanh(hw)
    H = HIDDEN
    acc = (jnp.dot(x_ref[...], w_ref[...], preferred_element_type=jnp.float32)
           + b_ref[...])
    xf_ref[...] = acc[:, :4 * H]
    xb_ref[...] = acc[:, 4 * H:8 * H]
    gate = jax.nn.sigmoid(acc[:, 8 * H:10 * H])
    hw = jnp.tanh(acc[:, 10 * H:12 * H])
    hwy_ref[...] = gate * hw


def hwy_projection(x_flat, w_all, b_all):
    """Row-tiled fused projection for one HighwayLSTM layer.
    x_flat:(M,In) bf16 -> (xproj_fwd(M,4H), xproj_bwd(M,4H), highway(M,2H)) all f32."""
    M, In = x_flat.shape
    H = HIDDEN
    TM = 512
    if M < TM:
        TM = _round_up(M, 8)
    M_full = _round_up(M, TM)
    if M_full != M:
        x_flat = jnp.pad(x_flat, ((0, M_full - M), (0, 0)))
    xf, xb, hwy = pl.pallas_call(
        _hwy_proj_kernel,
        out_shape=(jax.ShapeDtypeStruct((M_full, 4 * H), jnp.float32),
                   jax.ShapeDtypeStruct((M_full, 4 * H), jnp.float32),
                   jax.ShapeDtypeStruct((M_full, 2 * H), jnp.float32)),
        grid=(M_full // TM,),
        in_specs=[pl.BlockSpec((TM, In), lambda i: (i, 0)),
                  pl.BlockSpec((In, 12 * H), lambda i: (0, 0)),   # weights stay resident
                  pl.BlockSpec((1, 12 * H), lambda i: (0, 0))],
        out_specs=(pl.BlockSpec((TM, 4 * H), lambda i: (i, 0)),
                   pl.BlockSpec((TM, 4 * H), lambda i: (i, 0)),
                   pl.BlockSpec((TM, 2 * H), lambda i: (i, 0))),
        compiler_params=pltpu.CompilerParams(dimension_semantics=("parallel",)),
    )(x_flat, w_all, b_all)
    return xf[:M], xb[:M], hwy[:M]


# ---------- kernel 2: fused 4-head biaffine + combine + softmax + argmax ------
def _biaffine_combine_kernel(xq_ref, xf_ref, w1_ref, b1_ref, w2_ref, b2_ref,
                             wbf_ref, u_ref, v_ref, c_ref,
                             logp_ref, idx_ref, h2_sc, rvc_sc, *, t_valid):
    # xq  : (1, TQ, I)        bf16   row tile of the sentence's LSTM output
    # xf  : (1, T_pad, I)     bf16   full sentence (resident across row tiles)
    # w1/w2: (I, 4D) bf16, b1/b2: (1, 4D) f32    fused hidden projections (4 heads)
    # wbf : (4D, O_TOTAL*D)   bf16   BLOCK-DIAGONAL bilinear weight (one K=256 matmul)
    # u   : (4D, O_TOTAL)     bf16   rank-1 "ones"-column terms (h1 side)
    # v   : (O_TOTAL, 4D)     bf16   rank-1 row terms (h2 side)
    # c   : (O_TOTAL, 1)      f32    bilinear corner + output bias per slot
    # logp: (1, TQ, T_pad) f32   idx: (1, TQ, T_pad) int32
    D = DEEP_BIAFF
    q = pl.program_id(1)
    tq = xq_ref.shape[1]
    t_pad = xf_ref.shape[1]

    # per-sentence head-side cache: computed once at q == 0, reused by every row tile
    @pl.when(q == 0)
    def _():
        xf = xf_ref[0]                                                  # (T_pad, I)
        h2 = jnp.maximum(
            jnp.dot(xf, w2_ref[...], preferred_element_type=jnp.float32) + b2_ref[...],
            0.0)
        h2b = h2.astype(jnp.bfloat16)
        h2_sc[...] = h2b
        rvc_sc[...] = (jax.lax.dot_general(v_ref[...], h2b, (((1,), (1,)), ((), ())),
                                           preferred_element_type=jnp.float32)
                       + c_ref[...])                                    # (O, T_pad)

    xq = xq_ref[0]                                                      # (TQ, I)
    h1 = jnp.maximum(
        jnp.dot(xq, w1_ref[...], preferred_element_type=jnp.float32) + b1_ref[...], 0.0)
    h1b = h1.astype(jnp.bfloat16)
    ru = jnp.dot(h1b, u_ref[...], preferred_element_type=jnp.float32)   # (TQ, O)
    # ONE block-diagonal MXU pass: K = 4D = 256, N = O_TOTAL*D = 704 (lane-dense)
    t_all = jnp.dot(h1b, wbf_ref[...], preferred_element_type=jnp.float32)
    tb = t_all.astype(jnp.bfloat16)

    h2b = h2_sc[...]
    rvc = rvc_sc[...]
    h2g = [h2b[:, g * D:(g + 1) * D] for g in range(4)]                 # per-group views

    unl = lin = dist = best = bidx = None
    for o, g in enumerate(SLOT_GROUP):
        s = jax.lax.dot_general(tb[:, o * D:(o + 1) * D], h2g[g],
                                (((1,), (1,)), ((), ())),
                                preferred_element_type=jnp.float32)     # (TQ, T_pad)
        s = s + ru[:, o:o + 1] + rvc[o:o + 1, :]
        if g == 0:
            unl = s
        elif g == 1:                               # online argmax over deprel classes
            k = o - 1
            if k == 0:
                best = s
                bidx = jnp.zeros(s.shape, jnp.int32)
            else:
                upd = s > best
                best = jnp.where(upd, s, best)
                bidx = jnp.where(upd, k, bidx)
        elif g == 2:
            lin = s
        else:
            dist = s

    # combine: linearization + distance terms, diag/pad-column mask, log_softmax
    ii = jax.lax.broadcasted_iota(jnp.int32, (tq, t_pad), 0) + q * tq   # dependent index
    jj = jax.lax.broadcasted_iota(jnp.int32, (tq, t_pad), 1)            # head index
    off = (jj - ii).astype(jnp.float32)
    z = lin * jnp.sign(off)
    u = unl + (jnp.minimum(z, 0.0) - jnp.log1p(jnp.exp(-jnp.abs(z))))   # logsigmoid
    sp = jnp.maximum(dist, 0.0) + jnp.log1p(jnp.exp(-jnp.abs(dist)))    # softplus
    u = u - jnp.log((jnp.abs(off) - (1.0 + sp)) ** 2 / 2.0 + 1.0)
    # TODO(synk): EUP can bind here at large T; a polynomial log1p(exp(-|x|)) would trim
    # transcendentals -- kept exact for numerical parity with the reference.
    # diag mask (reference) + lane-padding columns must be -inf so the softmax denominator
    # matches the unpadded reference exactly.
    u = jnp.where((ii == jj) | (jj >= t_valid), -jnp.inf, u)
    m = jnp.max(u, axis=-1, keepdims=True)
    lse = m + jnp.log(jnp.sum(jnp.exp(u - m), axis=-1, keepdims=True))
    logp_ref[0] = u - lse
    # TODO(synk): idx could be int8 (N_DEPREL=8) to cut writeback 4x; int32 kept for parity.
    idx_ref[0] = bidx


def biaffine_combine(lstm_out, p):
    """Fused 4-head DeepBiaffineScorer + combine + log_softmax + deprel argmax.
    Row-tiled: grid=(B, T_pad//TQ); head-side projection cached in VMEM scratch."""
    B, T, I = lstm_out.shape
    D = DEEP_BIAFF
    T_pad = _round_up(T, 128)
    TQ = 256 if T_pad % 256 == 0 else 128
    nq = T_pad // TQ
    x = lstm_out.astype(jnp.bfloat16)
    if T_pad != T:
        x = jnp.pad(x, ((0, 0), (0, T_pad - T), (0, 0)))

    kernel = functools.partial(_biaffine_combine_kernel, t_valid=T)
    logp, idx = pl.pallas_call(
        kernel,
        out_shape=(jax.ShapeDtypeStruct((B, T_pad, T_pad), jnp.float32),
                   jax.ShapeDtypeStruct((B, T_pad, T_pad), jnp.int32)),
        grid=(B, nq),
        in_specs=[
            pl.BlockSpec((1, TQ, I), lambda b, q: (b, q, 0)),        # query-row tile
            pl.BlockSpec((1, T_pad, I), lambda b, q: (b, 0, 0)),     # full sentence (resident)
            pl.BlockSpec((I, 4 * D), lambda b, q: (0, 0)),
            pl.BlockSpec((1, 4 * D), lambda b, q: (0, 0)),
            pl.BlockSpec((I, 4 * D), lambda b, q: (0, 0)),
            pl.BlockSpec((1, 4 * D), lambda b, q: (0, 0)),
            pl.BlockSpec((4 * D, O_TOTAL * D), lambda b, q: (0, 0)),
            pl.BlockSpec((4 * D, O_TOTAL), lambda b, q: (0, 0)),
            pl.BlockSpec((O_TOTAL, 4 * D), lambda b, q: (0, 0)),
            pl.BlockSpec((O_TOTAL, 1), lambda b, q: (0, 0)),
        ],
        out_specs=(pl.BlockSpec((1, TQ, T_pad), lambda b, q: (b, q, 0)),
                   pl.BlockSpec((1, TQ, T_pad), lambda b, q: (b, q, 0))),
        scratch_shapes=[pltpu.VMEM((T_pad, 4 * D), jnp.bfloat16),     # h2 cache
                        pltpu.VMEM((O_TOTAL, T_pad), jnp.float32)],   # rank-1 + bias cache
        compiler_params=pltpu.CompilerParams(
            dimension_semantics=("parallel", "arbitrary"),
            vmem_limit_bytes=48 * 1024 * 1024),
    )(x, x, p['w1'], p['b1'], p['w2'], p['b2'], p['wbf'], p['u'], p['v'], p['c'])
    return logp[:, :T, :T], idx[:, :T, :T]


# ------------------------------- HighwayLSTM --------------------------------
def _lstm_direction(x_proj, mask, w_hh, b_hh, reverse):
    """One direction of a packed LSTM. x_proj:(B,T,4H) already contains W_ih x + b_ih.
    w_hh is stored pre-transposed as (H, 4H)."""
    B, T, H4 = x_proj.shape
    H = H4 // 4
    xs_x = jnp.transpose(x_proj, (1, 0, 2))            # (T,B,4H)
    xs_m = jnp.transpose(mask, (1, 0))[:, :, None]     # (T,B,1) bool
    if reverse:
        xs_x, xs_m = xs_x[::-1], xs_m[::-1]

    def step(carry, inp):
        h, c = carry
        xp, m = inp
        gates = xp + jnp.dot(h, w_hh) + b_hh
        i, f, g, o = jnp.split(gates, 4, axis=-1)
        i = jax.nn.sigmoid(i)
        f = jax.nn.sigmoid(f)
        g = jnp.tanh(g)
        o = jax.nn.sigmoid(o)
        c_new = f * c + i * g
        h_new = o * jnp.tanh(c_new)
        h = jnp.where(m, h_new, h)      # packed semantics: state untouched at pad steps
        c = jnp.where(m, c_new, c)
        out = jnp.where(m, h_new, 0.0)  # pad_packed_sequence pads with zeros
        return (h, c), out

    h0 = jnp.zeros((B, H), jnp.float32)   # parserlstm_h_init / c_init are zero params
    c0 = jnp.zeros((B, H), jnp.float32)
    _, outs = jax.lax.scan(step, (h0, c0), (xs_x, xs_m))
    if reverse:
        outs = outs[::-1]
    return jnp.transpose(outs, (1, 0, 2))   # (B,T,H)


def highway_lstm(x, mask, layer_params):
    """HighwayLSTM: out_l = BiLSTM_l(in_l) + sigmoid(gate(in_l)) * tanh(highway(in_l)).
    The four dense projections AND the highway nonlinearity run in one fused Pallas
    kernel per layer; the time recurrence stays in lax.scan."""
    B, T, _ = x.shape
    H = HIDDEN
    maskf = mask.astype(jnp.float32)[:, :, None]
    inp = x.astype(jnp.bfloat16)
    for p in layer_params:
        In = inp.shape[-1]
        flat = inp.reshape(B * T, In)
        xf, xb, hwy = hwy_projection(flat, p['w_all'], p['b_all'])     # f32 outputs
        xproj_f = xf.reshape(B, T, 4 * H)
        xproj_b = xb.reshape(B, T, 4 * H)
        # TODO(synk): the sequential LSTM recurrence stays in lax.scan (strict time
        # dependence); only its dense projections + highway gate are kernelized.
        out_f = _lstm_direction(xproj_f, mask, p['w_hh_f'], p['b_hh_f'], reverse=False)
        out_b = _lstm_direction(xproj_b, mask, p['w_hh_b'], p['b_hh_b'], reverse=True)
        lstm_out = jnp.concatenate([out_f, out_b], axis=-1)            # (B,T,2H)
        out = lstm_out + hwy.reshape(B, T, 2 * H)
        inp = (out * maskf).astype(jnp.bfloat16)   # bf16 at the source (feeds next kernel)
    return inp


# ------------------------------ parameter init ------------------------------
def init_params(key):
    ks = iter(jax.random.split(key, 200))

    def nrm(shape, scale=0.1):
        return (jax.random.normal(next(ks), shape) * scale).astype(jnp.float32)

    def emb(n, d):
        e = nrm((n, d), 1.0)
        return e.at[0].set(0.0)               # padding_idx=0

    p = {}
    p['word_emb'] = emb(N_WORD, WORD_EMB)
    p['lemma_emb'] = emb(N_LEMMA, WORD_EMB)
    p['upos_emb'] = emb(N_UPOS, TAG_EMB)
    p['xpos_emb'] = emb(N_XPOS, TAG_EMB)
    p['ufeats_emb'] = [emb(N_FEATS0, TAG_EMB), emb(N_FEATS1, TAG_EMB)]
    p['pretrained_emb'] = nrm((N_PRETRAIN, PRETRAIN_DIM), 1.0)
    trans_w = nrm((PRETRAIN_DIM, TRANSFORMED))   # (24,16), no bias -- folded into layer 0

    # HighwayLSTM layers: the 4 input projections (fwd/bwd w_ih, gate, highway) are stored
    # fused as (In, 12H); w_hh is pre-transposed (H, 4H) for the scan body.
    layers = []
    in_size = INPUT_SIZE
    for li in range(NUM_LAYERS):
        lp = {}
        w_parts, b_parts = [], []
        for d in ('f', 'b'):
            w_parts.append(nrm((in_size, 4 * HIDDEN)))     # w_ih (In, 4H)
            b_parts.append(nrm((4 * HIDDEN,)))
            lp[f'w_hh_{d}'] = nrm((HIDDEN, 4 * HIDDEN))    # pre-transposed
            lp[f'b_hh_{d}'] = nrm((4 * HIDDEN,))
        w_parts.append(nrm((in_size, 2 * HIDDEN)))          # gate
        b_parts.append(jnp.zeros((2 * HIDDEN,), jnp.float32))  # zeroed in HighwayLSTM.__init__
        w_parts.append(nrm((in_size, 2 * HIDDEN)))          # highway
        b_parts.append(jnp.zeros((2 * HIDDEN,), jnp.float32))
        w_all = jnp.concatenate(w_parts, axis=1)             # (In, 12H)
        if li == 0:
            # exact algebraic fold of trans_pretrained into the first TRANSFORMED rows:
            # layer 0 consumes the raw 24-dim pretrained embedding directly.
            w_all = jnp.concatenate([trans_w @ w_all[:TRANSFORMED, :],
                                     w_all[TRANSFORMED:, :]], axis=0)  # (72, 12H)
        lp['w_all'] = w_all.astype(jnp.bfloat16)
        lp['b_all'] = jnp.concatenate(b_parts).reshape(1, -1).astype(jnp.float32)
        layers.append(lp)
        in_size = 2 * HIDDEN
    p['lstm'] = layers

    # Fused DeepBiaffineScorer params (all 4 heads share one kernel).
    # NOTE: the real module zero-inits the bilinear weight/bias; random here so the kernel
    # output is non-trivial.  The (D+1)x(D+1) bilinear tensor is decomposed into the main
    # DxD block (stored BLOCK-DIAGONALLY in wbf so the first contraction is one K=256
    # matmul), rank-1 terms (u, v) and a scalar (c = corner + output bias).
    I = 2 * HIDDEN
    D = DEEP_BIAFF
    w1 = jnp.concatenate([nrm((I, D)) for _ in range(4)], axis=1)      # (I, 4D)
    b1 = jnp.concatenate([nrm((D,)) for _ in range(4)]).reshape(1, 4 * D)
    w2 = jnp.concatenate([nrm((I, D)) for _ in range(4)], axis=1)
    b2 = jnp.concatenate([nrm((D,)) for _ in range(4)]).reshape(1, 4 * D)
    wbf_bd = jnp.zeros((4 * D, O_TOTAL * D), jnp.float32)
    u_blk = jnp.zeros((4 * D, O_TOTAL), jnp.float32)
    v_blk = jnp.zeros((O_TOTAL, 4 * D), jnp.float32)
    for o, g in enumerate(SLOT_GROUP):
        wbf_bd = wbf_bd.at[g * D:(g + 1) * D, o * D:(o + 1) * D].set(nrm((D, D), 0.05))
        u_blk = u_blk.at[g * D:(g + 1) * D, o].set(nrm((D,), 0.05))
        v_blk = v_blk.at[o, g * D:(g + 1) * D].set(nrm((D,), 0.05))
    c = nrm((O_TOTAL, 1), 0.05)
    p['biaff'] = dict(w1=w1.astype(jnp.bfloat16), b1=b1,
                      w2=w2.astype(jnp.bfloat16), b2=b2,
                      wbf=wbf_bd.astype(jnp.bfloat16),
                      u=u_blk.astype(jnp.bfloat16),
                      v=v_blk.astype(jnp.bfloat16), c=c)
    return p


# ------------------------------ Parser.forward ------------------------------
def parser_forward(params, word, upos, xpos, ufeats, pretrained, lemma, head, sentlens):
    """Inference (eval) path of Parser.forward: returns (loss=0, [log_softmax heads, deprel argmax])."""
    B, T = word.shape
    mask = jnp.arange(T)[None, :] < sentlens[:, None]      # valid-token mask (packed seq)
    maskf = mask.astype(jnp.float32)

    # embeddings; trans_pretrained is folded into layer-0 w_all, so raw 24-dim emb is fed
    pre = params['pretrained_emb'][pretrained]                         # (B,T,PRETRAIN_DIM)
    w_emb = params['word_emb'][word]
    l_emb = params['lemma_emb'][lemma]
    pos_emb = params['upos_emb'][upos] + params['xpos_emb'][xpos]
    # reference forward computes feats_emb but appends pos_emb again (faithful repro)
    _feats_emb = (params['ufeats_emb'][0][ufeats[:, :, 0]]
                  + params['ufeats_emb'][1][ufeats[:, :, 1]])
    lstm_in = jnp.concatenate([pre, w_emb, l_emb, pos_emb, pos_emb], axis=-1)  # (B,T,72)
    lstm_in = lstm_in * maskf[:, :, None]
    # worddrop / dropout are identity in eval mode

    lstm_out = highway_lstm(lstm_in, mask, params['lstm'])             # (B,T,2*HIDDEN) bf16

    # fused biaffine heads + linearization/distance adjustments + diag mask +
    # log_softmax + deprel argmax: one row-tiled Pallas kernel.
    log_probs, deprel_pred = biaffine_combine(lstm_out, params['biaff'])

    loss = 0.0
    preds = [log_probs, deprel_pred]
    return loss, preds


# ----------------------------------- main ------------------------------------
if __name__ == "__main__":
    key = jax.random.PRNGKey(0)
    kp, kd = jax.random.split(key)
    params = init_params(kp)

    B, T = 2, 8
    sentlens = jnp.array([8, 6], dtype=jnp.int32)          # sorted desc, as pack requires
    valid = jnp.arange(T)[None, :] < sentlens[:, None]
    ks = jax.random.split(kd, 8)
    word = jnp.where(valid, jax.random.randint(ks[0], (B, T), 1, N_WORD), 0)
    lemma = jnp.where(valid, jax.random.randint(ks[1], (B, T), 1, N_LEMMA), 0)
    upos = jnp.where(valid, jax.random.randint(ks[2], (B, T), 1, N_UPOS), 0)
    xpos = jnp.where(valid, jax.random.randint(ks[3], (B, T), 1, N_XPOS), 0)
    uf0 = jax.random.randint(ks[4], (B, T), 1, N_FEATS0)
    uf1 = jax.random.randint(ks[5], (B, T), 1, N_FEATS1)
    ufeats = jnp.where(valid[:, :, None], jnp.stack([uf0, uf1], axis=-1), 0)
    pretrained = jnp.where(valid, jax.random.randint(ks[6], (B, T), 1, N_PRETRAIN), 0)
    head = jax.random.randint(ks[7], (B, T - 1), 0, T)     # only head.size(-1) used in eval

    loss, preds = parser_forward(params, word, upos, xpos, ufeats, pretrained,
                                 lemma, head, sentlens)
    jax.block_until_ready(preds)
    assert preds[0].shape == (B, T, T)
    assert preds[1].shape == (B, T, T)
    assert preds[1].dtype == jnp.int32
    assert bool(jnp.all(jnp.isfinite(preds[0]) | (preds[0] == -jnp.inf)))
    assert bool(jnp.all((preds[1] >= 0) & (preds[1] < N_DEPREL)))
    print("KERNEL_OK")
</pallas_src>

<mosaic_0001>
module attributes {stable_mosaic.version = 11 : i64} {
  func.func @_hwy_proj_kernel(%arg0: i32, %arg1: memref<16x72xbf16, #tpu.memory_space<vmem>>, %arg2: memref<72x384xbf16, #tpu.memory_space<vmem>>, %arg3: memref<1x384xf32, #tpu.memory_space<vmem>>, %arg4: memref<16x128xf32, #tpu.memory_space<vmem>>, %arg5: memref<16x128xf32, #tpu.memory_space<vmem>>, %arg6: memref<16x64xf32, #tpu.memory_space<vmem>>) attributes {dimension_semantics = [#tpu.dimension_semantics<parallel>], iteration_bounds = array<i64: 1>, scalar_prefetch = 0 : i64, scratch_operands = 0 : i64, tpu.core_type = #tpu.core_type<tc>, window_params = [{transform_indices = @transform_0, window_bounds = array<i64: 16, 72>}, {pipeline_mode = #tpu.pipeline_mode<synchronous>, transform_indices = @transform_1, window_bounds = array<i64: 72, 384>}, {pipeline_mode = #tpu.pipeline_mode<synchronous>, transform_indices = @transform_2, window_bounds = array<i64: 1, 384>}, {transform_indices = @transform_3, window_bounds = array<i64: 16, 128>}, {transform_indices = @transform_4, window_bounds = array<i64: 16, 128>}, {transform_indices = @transform_5, window_bounds = array<i64: 16, 64>}]} {
    %c0 = arith.constant 0 : index
    %c0_0 = arith.constant 0 : index
    %0 = vector.load %arg1[%c0, %c0_0] : memref<16x72xbf16, #tpu.memory_space<vmem>>, vector<16x72xbf16>
    %c0_1 = arith.constant 0 : index
    %c0_2 = arith.constant 0 : index
    %1 = vector.load %arg2[%c0_1, %c0_2] : memref<72x384xbf16, #tpu.memory_space<vmem>>, vector<72x384xbf16>
    %cst = arith.constant dense<0.000000e+00> : vector<16x384xf32>
    %2 = tpu.matmul %0, %1, %cst {dimension_numbers = #tpu.dot_dimension_numbers<[1], [0], [0], [1], [0, 0, 1, 1], [], []>} : vector<16x72xbf16>, vector<72x384xbf16>, vector<16x384xf32> -> vector<16x384xf32>
    %c0_3 = arith.constant 0 : index
    %c0_4 = arith.constant 0 : index
    %3 = vector.load %arg3[%c0_3, %c0_4] : memref<1x384xf32, #tpu.memory_space<vmem>>, vector<1x384xf32>
    %4 = vector.broadcast %3 : vector<1x384xf32> to vector<16x384xf32>
    %5 = arith.addf %2, %4 : vector<16x384xf32>
    %6 = vector.extract_strided_slice %5 {offsets = [0, 0], sizes = [16, 128], strides = [1, 1]} : vector<16x384xf32> to vector<16x128xf32>
    %c0_5 = arith.constant 0 : index
    %c0_6 = arith.constant 0 : index
    %7 = vector.load %arg4[%c0_5, %c0_6] : memref<16x128xf32, #tpu.memory_space<vmem>>, vector<16x128xf32>
    tpu.vector_store %arg4[%c0_5, %c0_6], %6 {strides = array<i32>} : memref<16x128xf32, #tpu.memory_space<vmem>>, vector<16x128xf32>,
    %8 = vector.extract_strided_slice %5 {offsets = [0, 128], sizes = [16, 128], strides = [1, 1]} : vector<16x384xf32> to vector<16x128xf32>
    %c0_7 = arith.constant 0 : index
    %c0_8 = arith.constant 0 : index
    %9 = vector.load %arg5[%c0_7, %c0_8] : memref<16x128xf32, #tpu.memory_space<vmem>>, vector<16x128xf32>
    tpu.vector_store %arg5[%c0_7, %c0_8], %8 {strides = array<i32>} : memref<16x128xf32, #tpu.memory_space<vmem>>, vector<16x128xf32>,
    %10 = vector.extract_strided_slice %5 {offsets = [0, 256], sizes = [16, 64], strides = [1, 1]} : vector<16x384xf32> to vector<16x64xf32>
    %11 = arith.negf %10 : vector<16x64xf32>
    %12 = math.exp %11 : vector<16x64xf32>
    %cst_9 = arith.constant 1.000000e+00 : f32
    %13 = vector.broadcast %cst_9 : f32 to vector<16x64xf32>
    %14 = arith.addf %13, %12 : vector<16x64xf32>
    %15 = arith.divf %13, %14 : vector<16x64xf32>
    %16 = vector.extract_strided_slice %5 {offsets = [0, 320], sizes = [16, 64], strides = [1, 1]} : vector<16x384xf32> to vector<16x64xf32>
    %17 = math.tanh %16 : vector<16x64xf32>
    %18 = arith.mulf %15, %17 : vector<16x64xf32>
    %c0_10 = arith.constant 0 : index
    %c0_11 = arith.constant 0 : index
    %19 = vector.load %arg6[%c0_10, %c0_11] : memref<16x64xf32, #tpu.memory_space<vmem>>, vector<16x64xf32>
    tpu.vector_store %arg6[%c0_10, %c0_11], %18 {strides = array<i32>} : memref<16x64xf32, #tpu.memory_space<vmem>>, vector<16x64xf32>,
    return
  }
  func.func @transform_0(%arg0: i32) -> (i32, i32) {
    %c0_i32 = arith.constant 0 : i32
    %c0_i32_0 = arith.constant 0 : i32
    return %arg0, %c0_i32 : i32, i32
  }
  func.func @transform_1(%arg0: i32) -> (i32, i32) {
    %c0_i32 = arith.constant 0 : i32
    %c0_i32_0 = arith.constant 0 : i32
    %c0_i32_1 = arith.constant 0 : i32
    return %c0_i32, %c0_i32_0 : i32, i32
  }
  func.func @transform_2(%arg0: i32) -> (i32, i32) {
    %c0_i32 = arith.constant 0 : i32
    %c0_i32_0 = arith.constant 0 : i32
    %c0_i32_1 = arith.constant 0 : i32
    return %c0_i32, %c0_i32_0 : i32, i32
  }
  func.func @transform_3(%arg0: i32) -> (i32, i32) {
    %c0_i32 = arith.constant 0 : i32
    %c0_i32_0 = arith.constant 0 : i32
    return %arg0, %c0_i32 : i32, i32
  }
  func.func @transform_4(%arg0: i32) -> (i32, i32) {
    %c0_i32 = arith.constant 0 : i32
    %c0_i32_0 = arith.constant 0 : i32
    return %arg0, %c0_i32 : i32, i32
  }
  func.func @transform_5(%arg0: i32) -> (i32, i32) {
    %c0_i32 = arith.constant 0 : i32
    %c0_i32_0 = arith.constant 0 : i32
    return %arg0, %c0_i32 : i32, i32
  }
}

</mosaic_0001>

<bundles_post_ra>
// kernel: tpu_custom_call.1
= control target key start
LH: loop header
LB: loop body
LE: loop exit
PB: predicated region body
PF: predicated region fallthrough
CT: control target
= control target key end

     0   :  { %11 = vsyncpa [#allocation3], 0  ;;  %s662_s0 = inlined_call_operand.hbm [shape: bf16[16,72], index: 0, kind: input, shape index: {}]   ;;  %s663_s1 = inlined_call_operand.hbm [shape: bf16[72,384], index: 1, kind: input, shape index: {}]   ;;  %s664_s2 = inlined_call_operand.hbm [shape: f32[1,384], index: 2, kind: input, shape index: {}]   ;;  %s665_s3 = inlined_call_operand.hbm [shape: f32[16,128], index: 3, kind: output, shape index: {0}]   ;;  %s666_s4 = inlined_call_operand.hbm [shape: f32[16,128], index: 4, kind: output, shape index: {1}]   ;;  %s667_s5 = inlined_call_operand.hbm [shape: f32[16,64], index: 5, kind: output, shape index: {2}]  }
   0x1   :  { %12 = vsyncpa [#allocation6], 0 }
   0x2   :  { %13 = vsyncpa [#allocation4], 0  ;;  %s32_s20 = sshll.u32 %s663_s1, 4  ;;  %s33_s20 = int_to_ptr.hbm [resolvable:$true] %s32_s20 }
   0x3   :  { %14 = vsyncpa [#allocation10], 0  ;;  %s584_s21 = smov [#allocation5]   ;;  %s19_s25 = sshll.u32 %s662_s0, 4  ;;  %s20_s25 = int_to_ptr.hbm [resolvable:$true] %s19_s25 }
   0x4   :  { %s34_s22 = sshll.u32 %s584_s21, 4  ;;  %s585_s26 = smov 192   ;;  %s35_s22 = int_to_ptr.vmem [resolvable:$true] %s34_s22 }
   0x5   :  { %s586_s27 = smov 12   ;;  %s587_s28 = smov [#allocation2]  }
   0x6   :  { %40 = dma.hbm_to_vmem [thread:$0]  %s33_s20, 1728, %s35_s22, [#allocation6], %s585_s26, %s585_s26, %s586_s27  }
   0x7   :  { %s21_s29 = sshll.u32 %s587_s28, 4  ;;  %s588_s30 = smov 64   ;;  %s22_s29 = int_to_ptr.vmem [resolvable:$true] %s21_s29 }
   0x8   :  { %s589_s6 = smov 4   ;;  %s46_s8 = sshll.u32 %s664_s2, 4  ;;  %s47_s8 = int_to_ptr.hbm [resolvable:$true] %s46_s8 }
   0x9   :  { %27 = dma.hbm_to_vmem [thread:$0]  %s20_s25, 128, %s22_s29, [#allocation3], %s588_s30, %s588_s30, %s589_s6  }
   0xa   :  { %s590_s9 = smov [#allocation7]  }
   0xb   :  { %s48_s10 = sshll.u32 %s590_s9, 4  ;;  %s49_s10 = int_to_ptr.vmem [resolvable:$true] %s48_s10 }
   0xc   :  { %51 = dma.hbm_to_vmem [thread:$0]  %s47_s8, 48, %s49_s10, [#allocation6]  }
   0xd   :  { %576 = dma.done.wait [#allocation3], 128  }
   0xe   :  { %577 = vsyncadd [#allocation3], 4294967168 }
   0xf   :  { %578 = dma.done.wait [#allocation6], 1776  }
  0x10   :  { %579 = vsyncadd [#allocation6], 4294965520  ;;  %v84_v0 = vld [vmem:[#allocation5 + $0x68] sm:$0xf]  ;;  %vm174_vm0 = vcmask 1043456   ;;  %v83_v5 = vld [vmem:[#allocation5 + $0x60] sm:$0xff] }
  0x11   :  { %v142_v1 = vunpack.c.l.b16 %v84_v0  ;;  %v388_v3 = vld [vmem:[#allocation5 + $0x50] sm:$0xf]  ;;  %v407_v4 = vld [vmem:[#allocation5 + $0x58] sm:$0xf0]  ;;  %v141_v6 = vunpack.c.h.b16 %v83_v5  ;;  %v140_v7 = vunpack.c.l.b16 %v83_v5  ;;  %v405_v9 = vld [vmem:[#allocation5 + $0x4c] sm:$0xf] }
  0x12   :  { %v389_v10 = vor.u32 %v407_v4, %v388_v3  ;;  %v382_v13 = vld [vmem:[#allocation5 + $0x54] sm:$0xf0]  ;;  %v380_v14 = vld [vmem:[#allocation5 + $0x48] sm:$0xf]  ;;  %v406_v15 = vld [vmem:[#allocation5 + $0x50] sm:$0xf0] }
  0x13   :  { %v157_v2 = vpack.c.b16 %v142_v1, %v142_v1  ;;  %v156_v11 = vpack.c.b16 %v141_v6, %v141_v6  ;;  %v155_v12 = vpack.c.b16 %v140_v7, %v140_v7  ;;  %v376_v16 = vld [vmem:[#allocation5 + $0x38] sm:$0xf]  ;;  %v404_v17 = vld [vmem:[#allocation5 + $0x40] sm:$0xf0]  ;;  %v385_v20 = vor.u32 %v405_v9, %v382_v13  ;;  %v402_v22 = vld [vmem:[#allocation5 + $0x34] sm:$0xf] }
  0x14   :  { %v381_v21 = vor.u32 %v406_v15, %v380_v14  ;;  %v377_v23 = vor.u32 %v404_v17, %v376_v16  ;;  %v370_v24 = vld [vmem:[#allocation5 + $0x3c] sm:$0xf0]  ;;  %v368_v25 = vld [vmem:[#allocation5 + $0x30] sm:$0xf]  ;;  %v403_v26 = vld [vmem:[#allocation5 + $0x38] sm:$0xf0] }
  0x15   :  { %v182_v8 = vsel %vm174_vm0, %v157_v2, 0  ;;  %v179_v18 = vsel %vm174_vm0, %v156_v11, 0  ;;  %v176_v19 = vsel %vm174_vm0, %v155_v12, 0  ;;  %v364_v27 = vld [vmem:[#allocation5 + $0x20] sm:$0xf]  ;;  %v373_v29 = vor.u32 %v402_v22, %v370_v24  ;;  %v395_v45 = vld [vmem:[#allocation2] sm:$0xff] }
  0x16   :  { %215 = vmatpush.bf16.msra.mxu2 %v182_v8  ;;  %201 = vmatpush.bf16.msra.mxu1 %v179_v18  ;;  %v401_v28 = vld [vmem:[#allocation5 + $0x28] sm:$0xf0]  ;;  %v369_v30 = vor.u32 %v403_v26, %v368_v25  ;;  %v399_v31 = vld [vmem:[#allocation5 + $0x1c] sm:$0xf]  ;;  %v358_v33 = vld [vmem:[#allocation5 + $0x24] sm:$0xf0] }
  0x17   :  { %187 = vmatpush.bf16.msra.mxu0 %v176_v19  ;;  %v365_v32 = vor.u32 %v401_v28, %v364_v27  ;;  %v356_v34 = vld [vmem:[#allocation5 + $0x18] sm:$0xf]  ;;  %v400_v35 = vld [vmem:[#allocation5 + $0x20] sm:$0xf0]  ;;  %v352_v36 = vld [vmem:[#allocation5 + $0x8] sm:$0xf]  ;;  %v361_v38 = vor.u32 %v399_v31, %v358_v33 }
  0x18   :  { %v398_v37 = vld [vmem:[#allocation5 + $0x10] sm:$0xf0]  ;;  %v357_v39 = vor.u32 %v400_v35, %v356_v34  ;;  %v396_v41 = vld [vmem:[#allocation5 + $0x4] sm:$0xf]  ;;  %v346_v42 = vld [vmem:[#allocation5 + $0xc] sm:$0xf0] }
  0x19   :  { %v353_v40 = vor.u32 %v398_v37, %v352_v36  ;;  %v344_v43 = vld [vmem:[#allocation5] sm:$0xf]  ;;  %v397_v44 = vld [vmem:[#allocation5 + $0x8] sm:$0xf0]  ;;  %v349_v46 = vor.u32 %v396_v41, %v346_v42  ;;  %vm170_vm1 = vcmask 588800   ;;  %s591_s0 = smov [#allocation9]  }
  0x1a   :  { %216 = vmatpush.bf16.msra.mxu2 %v389_v10  ;;  %202 = vmatpush.bf16.msra.mxu1 %v385_v20  ;;  %v345_v47 = vor.u32 %v397_v44, %v344_v43  ;;  %v85_v48 = vld [vmem:[#allocation7] sm:$0x7]  ;;  %s300_s2 = sshll.u32 %s591_s0, 4  ;;  %s302_s13 = sshll.u32 %s666_s4, 4  ;;  %vm280_vm6 = vcmask 523264   ;;  %s301_s2 = int_to_ptr.vmem [resolvable:$true] %s300_s2  ;;  %s303_s13 = int_to_ptr.hbm [resolvable:$true] %s302_s13 }
  0x1b   :  { %188 = vmatpush.bf16.msra.mxu0 %v381_v21  ;;  %v88_v49 = vperm.slane %v85_v48, 1  ;;  %v87_v50 = vperm.slane %v85_v48, 0  ;;  %v89_v51 = vperm.slane %v85_v48, 2  ;;  %s592_s14 = smov 128   ;;  %s593_s15 = smov 8  }
  0x1c   :  { %s594_s4 = smov [#allocation8]   ;;  %s289_s19 = sshll.u32 %s665_s3, 4  ;;  %s290_s19 = int_to_ptr.hbm [resolvable:$true] %s289_s19 }
  0x1d   :  { %s287_s16 = sshll.u32 %s594_s4, 4  ;;  %s595_s3 = smov [#allocation11]   ;;  %s288_s16 = int_to_ptr.vmem [resolvable:$true] %s287_s16 }
  0x1e   :  { %217 = vmatpush.bf16.msra.mxu2 %v377_v23  ;;  %203 = vmatpush.bf16.msra.mxu1 %v373_v29  ;;  %s313_s20 = sshll.u32 %s595_s3, 4  ;;  %s315_s23 = sshll.u32 %s667_s5, 4  ;;  %s314_s20 = int_to_ptr.vmem [resolvable:$true] %s313_s20  ;;  %s316_s23 = int_to_ptr.hbm [resolvable:$true] %s315_s23 }
  0x1f   :  { %189 = vmatpush.bf16.msra.mxu0 %v369_v30 }
  0x22   :  { %218 = vmatpush.bf16.msra.mxu2 %v365_v32  ;;  %204 = vmatpush.bf16.msra.mxu1 %v361_v38 }
  0x23   :  { %190 = vmatpush.bf16.msra.mxu0 %v357_v39 }
  0x26   :  { %219 = vmatpush.bf16.msra.mxu2 %v353_v40  ;;  %205 = vmatpush.bf16.msra.mxu1 %v349_v46 }
  0x27   :  { %191 = vmatpush.bf16.msra.mxu0 %v345_v47 }
  0x29   :  { %392 = vmatmul.msk.bf16.vlgmr.msra.gmra.mxu2 %vm170_vm1, %v395_v45  ;;  %391 = vmatmul.msk.bf16.vlgmr.msra.gmra.mxu1 %vm170_vm1, %v395_v45 }
  0x2a   :  { %390 = vmatmul.msk.bf16.vlgmr.msra.gmra.mxu0 %vm170_vm1, %v395_v45 }
  0xa6   :  { %v207_v52 = vpop.f32.mrf.mxu1 }
  0xa7   :  { %v208_v53 = vadd.f32 %v207_v52, %v88_v49  ;;  %v193_v54 = vpop.f32.mrf.mxu0 }
  0xa8   :  { %v194_v55 = vadd.f32 %v193_v54, %v87_v50 }
  0xa9   :  { %228 = vst [vmem:[#allocation9] sm:$0xff] %v208_v53 }
  0xaa   :  { %226 = vst [vmem:[#allocation8] sm:$0xff] %v194_v55 }
  0xac   :  { %v221_v56 = vpop.f32.mrf.mxu2 }
  0xad   :  { %v222_v57 = vadd.f32 %v221_v56, %v89_v51 }
  0xae   :  { %v209_v58 = vpop.f32.mrf.mxu1 }
  0xaf   :  { %420 = vtanh.f32 %v222_v57  ;;  %v210_v59 = vadd.f32 %v209_v58, %v88_v49  ;;  %v393_v0 = vmul.f32 -1.442695, %v222_v57  ;;  %v195_v4 = vpop.f32.mrf.mxu0 }
  0xb0   :  { %v196_v5 = vadd.f32 %v195_v4, %v87_v50 }
  0xb1   :  { %229 = vst [vmem:[#allocation9 + $0x8] sm:$0xff] %v210_v59 }
  0xb2   :  { %308 = dma.vmem_to_hbm [thread:$0]  %s301_s2, 256, %s303_s13, [#allocation10], %s592_s14, %s592_s14, %s593_s15   ;;  %227 = vst [vmem:[#allocation8 + $0x8] sm:$0xff] %v196_v5 }
  0xb3   :  { %295 = dma.vmem_to_hbm [thread:$0]  %s288_s16, 256, %s290_s19, [#allocation4], %s592_s14, %s592_s14, %s593_s15  }
  0xb4   :  { %v223_v60 = vpop.f32.mrf.mxu2 }
  0xb5   :  { %v421_v61 = vpop.eup %420  ;;  %v224_v62 = vadd.f32 %v223_v60, %v89_v51 }
  0xb6   :  { %272 = vrot.lane.b32.xlu0 %v421_v61, %s588_s30 }
  0xb7   :  { %422 = vtanh.f32 %v224_v62  ;;  %v394_v1 = vmul.f32 -1.442695, %v224_v62 }
  0xb8   :  { %424 = vpow2.f32 %v393_v0 }
  0xb9   :  { %426 = vpow2.f32 %v394_v1 }
  0xbd   :  { %v423_v63 = vpop.eup %422 }
  0xbe   :  { %274 = vrot.lane.b32.xlu0 %v423_v63, %s588_s30  ;;  %v425_v2 = vpop.eup %424 }
  0xbf   :  { %v236_v3 = vadd.f32 1.0, %v425_v2  ;;  %v427_v6 = vpop.eup %426 }
  0xc0   :  { %v237_v7 = vadd.f32 1.0, %v427_v6 }
  0xc1   :  { %428 = vrcp.f32 %v236_v3  ;;  %v249_v16 = vand.u32 2147483648, %v236_v3  ;;  %vm243_vm3 = vweird.f32 %v236_v3  ;;  %v247_v17 = vand.u32 2147483647, %v236_v3 }
  0xc2   :  { %430 = vrcp.f32 %v237_v7  ;;  %v264_v25 = vand.u32 2147483648, %v237_v7  ;;  %vm258_vm8 = vweird.f32 %v237_v7  ;;  %v262_v26 = vand.u32 2147483647, %v237_v7 }
  0xc3   :  { %v250_v20 = vor.u32 1.1754944e-38, %v249_v16  ;;  %vm248_vm5 = vcmp.eq.f32.partialorder %v247_v17, 8.507059e+37 }
  0xc4   :  { %v265_v28 = vor.u32 1.1754944e-38, %v264_v25  ;;  %vm263_vm10 = vcmp.eq.f32.partialorder %v262_v26, 8.507059e+37 }
  0xc7   :  { %v429_v8 = vpop.eup %428 }
  0xc8   :  { %v239_v9 = vmul.f32 %v429_v8, %v236_v3  ;;  %v431_v11 = vpop.eup %430  ;;  %vm244_vm2 = vweird.f32 %v429_v8 }
  0xc9   :  { %v254_v13 = vmul.f32 %v431_v11, %v237_v7  ;;  %vm245_vm4 = vmor %vm243_vm3, %vm244_vm2  ;;  %vm259_vm7 = vweird.f32 %v431_v11 }
  0xca   :  { %v240_v10 = vsub.f32 1.0, %v239_v9  ;;  %vm260_vm9 = vmor %vm258_vm8, %vm259_vm7 }
  0xcb   :  { %v255_v15 = vsub.f32 1.0, %v254_v13 }
  0xcc   :  { %v241_v12 = vmul.f32 %v429_v8, %v240_v10 }
  0xcd   :  { %v256_v19 = vmul.f32 %v431_v11, %v255_v15 }
  0xce   :  { %v242_v14 = vadd.f32 %v429_v8, %v241_v12 }
  0xcf   :  { %v257_v24 = vadd.f32 %v431_v11, %v256_v19 }
  0xd0   :  { %v246_v18 = vsel %vm245_vm4, %v429_v8, %v242_v14 }
  0xd1   :  { %v251_v22 = vsel %vm248_vm5, %v250_v20, %v246_v18  ;;  %v261_v27 = vsel %vm260_vm9, %v431_v11, %v257_v24 }
  0xd2   :  { %v266_v29 = vsel %vm263_vm10, %v265_v28, %v261_v27 }
 0x128   :  { %v273_v21 = vpop.permute.xlu0 %272 }
 0x129   :  { %v278_v23 = vmul.f32 %v273_v21, %v251_v22 }
 0x12b   :  { %281 = vst.msk [vmem:[#allocation11] sm:$0xff] %vm280_vm6, %v278_v23 }
 0x130   :  { %v275_v30 = vpop.permute.xlu0 %274 }
 0x131   :  { %v279_v31 = vmul.f32 %v275_v30, %v266_v29 }
 0x133   :  { %282 = vst.msk [vmem:[#allocation11 + $0x8] sm:$0xff] %vm280_vm6, %v279_v31 }
 0x134   :  { %321 = dma.vmem_to_hbm [thread:$0]  %s314_s20, 256, %s316_s23, [#allocation10], %s592_s14, %s592_s14, %s593_s15  }
 0x135   :  { %580 = dma.done.wait [#allocation4], 256  }
 0x136   :  { %581 = vsyncadd [#allocation4], 4294967040 }
 0x137   :  { %582 = dma.done.wait [#allocation10], 512  }
 0x138   :  { %583 = vsyncadd [#allocation10], 4294966784 }
 0x139   :  { %334 = vsyncpa [#allocation3], 1 }
 0x13a   :  { %335 = vsyncpa [#allocation6], 1 }
 0x13b   :  { %336 = vsyncpa [#allocation4], 1 }
 0x13c   :  { %337 = vsyncpa [#allocation10], 1 }

</bundles_post_ra>
